<compile_context>
chip_gen: v7x
topology: tpu7x:2x2x1
jax: 0.10.0
libtpu: 0.0.40
codegen_flags: <defaults>
</compile_context>

<pallas_src>
import functools
import math

import jax
import jax.numpy as jnp
from jax import lax
from jax.experimental import pallas as pl
from jax.experimental.pallas import tpu as pltpu

VERY_NEGATIVE_NUMBER = -1e30  # exp_mask: val + (1 - mask) * VERY_NEGATIVE_NUMBER


def _gat_kernel(q_ref, k_ref, mask_ref, rep_ref, o_ref,
                m_sc, l_sc, acc_sc, *, scale, tk, k_resident):
    # q_ref:    (1, tq, hn)          query tile of hidden_states (input dtype)
    # k_ref:    (1, tk|sl_pad, hn)   key/value tile (or full resident K)
    # mask_ref: (1, tq, tk)          graph mask tile (native dtype)
    # rep_ref:  (1, tq, 1)           representation mask tile
    # o_ref:    (1, tq, hn)          output tile (written on the last key step)
    # scratch:  m_sc (tq,1) f32, l_sc (tq,1) f32, acc_sc (tq,hn) f32
    ki = pl.program_id(2)

    @pl.when(ki == 0)
    def _init():
        m_sc[...] = jnp.full_like(m_sc, -jnp.inf)
        l_sc[...] = jnp.zeros_like(l_sc)
        acc_sc[...] = jnp.zeros_like(acc_sc)

    q = q_ref[0]                                   # (tq, hn), input dtype
    scale_q = q.dtype == jnp.float32               # fold scale into q when exact-ish
    if scale_q:
        q = q * scale

    if k_resident:
        # K block holds the whole (padded) sequence once per batch element;
        # slice out this key step's tile without re-streaming from HBM.
        kv = k_ref.at[0]                           # (sl_pad, hn) ref view (no load)
        start = pl.multiple_of(ki * tk, tk)
        k = kv[pl.ds(start, tk), :]                # (tk, hn)
    else:
        k = k_ref[0]                               # (tk, hn)

    # scores = q @ k^T : contract the last dims of both operands so the MXU
    # consumes k directly (no explicit transpose); accumulate in f32.
    scores = lax.dot_general(q, k, (((1,), (1,)), ((), ())),
                             preferred_element_type=jnp.float32)   # (tq, tk)
    if not scale_q:
        scores = scores * scale

    # exp_mask: additive masking, identical to the reference (soft masks OK).
    gmask = mask_ref[0].astype(jnp.float32)        # (tq, tk)
    scores = scores + (1.0 - gmask) * VERY_NEGATIVE_NUMBER

    # Online softmax update.
    m_prev = m_sc[...]                             # (tq, 1)
    m_new = jnp.maximum(m_prev, jnp.max(scores, axis=-1, keepdims=True))
    alpha = jnp.exp(m_prev - m_new)
    p = jnp.exp(scores - m_new)                    # (tq, tk) f32
    l_sc[...] = alpha * l_sc[...] + jnp.sum(p, axis=-1, keepdims=True)
    acc_sc[...] = alpha * acc_sc[...] + jnp.dot(
        p.astype(k.dtype), k, preferred_element_type=jnp.float32)
    m_sc[...] = m_new

    @pl.when(ki == pl.num_programs(2) - 1)
    def _finalize():
        l = l_sc[...]
        inv_l = pl.reciprocal(l, approx=True)      # EUP slot (nearly free)
        inv_l = inv_l * (2.0 - l * inv_l)          # one Newton step -> ~f32 exact
        rep = rep_ref[0].astype(jnp.float32)       # (tq, 1)
        # zero_mask(rep_mask, attn_res, high_rank=True): multiply, bcast on hn.
        o_ref[0] = (acc_sc[...] * inv_l * rep).astype(o_ref.dtype)


def _round_up(x, m):
    return ((x + m - 1) // m) * m


def _sublane(dtype):
    return {4: 8, 2: 16, 1: 32}.get(jnp.dtype(dtype).itemsize, 8)


def _largest_aligned_divisor(n, target, align):
    """Largest multiple of `align` <= target that divides n (requires n % align == 0)."""
    t = (min(target, n) // align) * align
    while t > align:
        if n % t == 0:
            return t
        t -= align
    return align


def _vmem_bytes(tq, tk, k_rows, hn, h_dtype, mask_dtype, rep_dtype):
    """Rough VMEM footprint: double-buffered blocks (sublane-correct padding per
    dtype) + scratch + the compiler-managed (tq,tk) f32 intermediates."""
    hn_l = _round_up(hn, 128)
    tk_l = _round_up(tk, 128)
    h_isz = jnp.dtype(h_dtype).itemsize
    m_isz = jnp.dtype(mask_dtype).itemsize
    r_isz = jnp.dtype(rep_dtype).itemsize
    q_blk = 2 * _round_up(tq, _sublane(h_dtype)) * hn_l * h_isz
    k_blk = 2 * _round_up(k_rows, _sublane(h_dtype)) * hn_l * h_isz
    m_blk = 2 * _round_up(tq, _sublane(mask_dtype)) * tk_l * m_isz
    r_blk = 2 * _round_up(tq, _sublane(rep_dtype)) * 128 * r_isz
    o_blk = 2 * _round_up(tq, _sublane(h_dtype)) * hn_l * h_isz
    scratch = (2 * _round_up(tq, 8) * 128 + _round_up(tq, 8) * hn_l) * 4
    inter = 3 * _round_up(tq, 8) * tk_l * 4        # scores / p / p-cast live temporaries
    return q_blk + k_blk + m_blk + r_blk + o_blk + scratch + inter


def _vmem_capacity_bytes():
    try:
        cap = getattr(pltpu.get_tpu_info(), "vmem_capacity_bytes", None)
        if cap:
            return int(cap)
    except Exception:
        pass
    return 64 << 20   # conservative default (v7x per-TensorCore VMEM)


_TILE_CANDIDATES = ((512, 2048), (512, 1024), (256, 1024), (256, 512),
                    (128, 512), (128, 256), (128, 128))


def _select_tiles(sl, hn, h_dtype, mask_dtype, rep_dtype, budget):
    """Returns (sl_pad, tq, tk): the biggest candidate tiles that fit the VMEM
    budget, with sl padded so the tiles divide exactly (no O(sl^2) fallback)."""
    if sl <= 128:
        sl_pad = _round_up(max(sl, 8), 8)
        return sl_pad, sl_pad, sl_pad
    sl_pad = _round_up(sl, 128)
    tq = tk = 128
    for tq_t, tk_t in _TILE_CANDIDATES:
        tq = _largest_aligned_divisor(sl_pad, tq_t, 128)
        tk = _largest_aligned_divisor(sl_pad, tk_t, 128)
        if _vmem_bytes(tq, tk, tk, hn, h_dtype, mask_dtype, rep_dtype) <= budget:
            break
    return sl_pad, tq, tk


def gat_nonparam(hidden_states, rep_mask, attn_mask, *, tile_q=None, tile_k=None):
    """hidden_states: (bs, sl, hn); rep_mask: (bs, sl); attn_mask: (bs, sl, sl).

    Exact reference semantics: additive exp_mask (soft masks supported) and a
    multiplicative zero_mask.  `tile_q` / `tile_k` are optional overrides
    (must divide the padded sequence length).
    """
    bs, sl, hn = hidden_states.shape
    dtype = hidden_states.dtype
    h_isz = jnp.dtype(dtype).itemsize
    m_dtype = attn_mask.dtype
    r_dtype = rep_mask.dtype

    vmem_cap = _vmem_capacity_bytes()
    budget = max(int(0.65 * vmem_cap), vmem_cap - (32 << 20))

    sl_pad, tq, tk = _select_tiles(sl, hn, dtype, m_dtype, r_dtype, budget)

    if tile_q is not None or tile_k is not None:
        tq = tile_q if tile_q is not None else tq
        tk = tile_k if tile_k is not None else tk
    else:
        # v7x has 2 TensorCores sharing the parallel grid axes; make sure there
        # are at least two parallel units of work when possible.
        if bs * (sl_pad // tq) < 2 and tq % 256 == 0:
            tq //= 2
    assert sl_pad % tq == 0 and sl_pad % tk == 0, (sl_pad, tq, tk)

    n_qt = sl_pad // tq
    n_kt = sl_pad // tk

    # Make K resident in VMEM per batch element when it fits: K is then DMA'd
    # once per b instead of once per (b, q-tile, k-tile).
    k_resident = (n_kt > 1 and
                  _vmem_bytes(tq, tk, sl_pad, hn, dtype, m_dtype, r_dtype) <= budget)
    k_rows = sl_pad if k_resident else tk

    est = _vmem_bytes(tq, tk, k_rows, hn, dtype, m_dtype, r_dtype)
    vmem_limit = int(min(vmem_cap, max(int(est * 1.25) + (8 << 20), 32 << 20)))

    # Zero-pad sl so the tiles divide exactly.  Padded key columns are masked
    # out by the zero-padded attn_mask; padded query rows are sliced off below.
    if sl_pad != sl:
        pad = sl_pad - sl
        h_in = jnp.pad(hidden_states, ((0, 0), (0, pad), (0, 0)))
        mask_in = jnp.pad(attn_mask, ((0, 0), (0, pad), (0, pad)))
        rep_in = jnp.pad(rep_mask, ((0, 0), (0, pad)))
    else:
        h_in, mask_in, rep_in = hidden_states, attn_mask, rep_mask
    rep_in = rep_in[..., None]          # (bs, sl_pad, 1), native dtype

    if k_resident:
        k_spec = pl.BlockSpec((1, sl_pad, hn), lambda b, qi, ki: (b, 0, 0))
        k_bytes = bs * sl_pad * hn * h_isz
    else:
        k_spec = pl.BlockSpec((1, tk, hn), lambda b, qi, ki: (b, ki, 0))
        k_bytes = bs * (n_qt if n_kt > 1 else 1) * sl_pad * hn * h_isz

    cost = pl.CostEstimate(
        flops=4 * bs * sl_pad * sl_pad * hn,
        transcendentals=bs * sl_pad * sl_pad + bs * sl_pad * n_kt,
        bytes_accessed=int(bs * sl_pad * hn * h_isz                    # q
                           + k_bytes                                   # k/v
                           + bs * sl_pad * sl_pad * jnp.dtype(m_dtype).itemsize
                           + bs * sl_pad * jnp.dtype(r_dtype).itemsize
                           + bs * sl_pad * hn * h_isz))                # out

    kernel = functools.partial(_gat_kernel, scale=1.0 / math.sqrt(sl),
                               tk=tk, k_resident=k_resident)

    out = pl.pallas_call(
        kernel,
        out_shape=jax.ShapeDtypeStruct((bs, sl_pad, hn), dtype),
        grid_spec=pltpu.PrefetchScalarGridSpec(
            num_scalar_prefetch=0,
            grid=(bs, n_qt, n_kt),
            in_specs=[
                pl.BlockSpec((1, tq, hn), lambda b, qi, ki: (b, qi, 0)),   # q
                k_spec,                                                    # k/v
                pl.BlockSpec((1, tq, tk), lambda b, qi, ki: (b, qi, ki)),  # mask
                pl.BlockSpec((1, tq, 1), lambda b, qi, ki: (b, qi, 0)),    # rep
            ],
            out_specs=pl.BlockSpec((1, tq, hn), lambda b, qi, ki: (b, qi, 0)),
            scratch_shapes=[
                pltpu.VMEM((tq, 1), jnp.float32),    # running max
                pltpu.VMEM((tq, 1), jnp.float32),    # running sum
                pltpu.VMEM((tq, hn), jnp.float32),   # output accumulator
            ],
        ),
        compiler_params=pltpu.CompilerParams(
            dimension_semantics=("parallel", "parallel", "arbitrary"),
            vmem_limit_bytes=vmem_limit),
        cost_estimate=cost,
    )(h_in, h_in, mask_in, rep_in)

    if sl_pad != sl:
        out = out[:, :sl, :]
    return out


def _reference(hidden_states, rep_mask, attn_mask):
    sl = hidden_states.shape[1]
    scores = jnp.einsum("bsh,bth->bst", hidden_states, hidden_states) / (sl ** 0.5)
    scores = scores + (1.0 - attn_mask) * VERY_NEGATIVE_NUMBER
    prob = jax.nn.softmax(scores, axis=-1)
    res = jnp.einsum("bst,bth->bsh", prob, hidden_states)
    return res * rep_mask[..., None]


def _run_case(key, bs, sl, hn, **kw):
    k1, k2, k3 = jax.random.split(key, 3)
    h = jax.random.normal(k1, (bs, sl, hn), dtype=jnp.float32)
    rep = (jax.random.uniform(k2, (bs, sl)) > 0.3).astype(jnp.float32)
    attn = (jax.random.uniform(k3, (bs, sl, sl)) > 0.3).astype(jnp.float32)
    # keep the diagonal valid so no row is fully masked (degenerate case)
    attn = jnp.maximum(attn, jnp.eye(sl, dtype=jnp.float32)[None])

    out = jax.block_until_ready(gat_nonparam(h, rep, attn, **kw))
    ref = _reference(h, rep, attn)
    assert out.shape == (bs, sl, hn)
    err = jnp.max(jnp.abs(out - ref))
    assert jnp.allclose(out, ref, atol=1e-3, rtol=1e-3), f"mismatch vs reference: {err}"
    return out


if __name__ == "__main__":
    key = jax.random.PRNGKey(0)
    k1, k2, k3 = jax.random.split(key, 3)

    # 1) tiny shape: single tile per axis.
    _run_case(k1, bs=2, sl=8, hn=32)
    # 2) non-divisible sl -> exercises the zero-padding path (sl=200 -> 256).
    _run_case(k2, bs=1, sl=200, hn=64)
    # 3) multiple key tiles with VMEM-resident K (online softmax + pl.ds slicing).
    _run_case(k3, bs=1, sl=256, hn=64, tile_q=128, tile_k=128)

    print("KERNEL_OK")
</pallas_src>

<mosaic_0001>
module attributes {stable_mosaic.version = 11 : i64} {
  func.func @_gat_kernel(%arg0: i32, %arg1: i32, %arg2: i32, %arg3: memref<1x8x32xf32, #tpu.memory_space<vmem>>, %arg4: memref<1x8x32xf32, #tpu.memory_space<vmem>>, %arg5: memref<1x8x8xf32, #tpu.memory_space<vmem>>, %arg6: memref<1x8x1xf32, #tpu.memory_space<vmem>>, %arg7: memref<1x8x32xf32, #tpu.memory_space<vmem>>, %arg8: memref<8x1xf32, #tpu.memory_space<vmem>>, %arg9: memref<8x1xf32, #tpu.memory_space<vmem>>, %arg10: memref<8x32xf32, #tpu.memory_space<vmem>>) attributes {dimension_semantics = [#tpu.dimension_semantics<parallel>, #tpu.dimension_semantics<parallel>, #tpu.dimension_semantics<arbitrary>], iteration_bounds = array<i64: 2, 1, 1>, scalar_prefetch = 0 : i64, scratch_operands = 3 : i64, tpu.core_type = #tpu.core_type<tc>, window_params = [{transform_indices = @transform_0, window_bounds = array<i64: 1, 8, 32>}, {transform_indices = @transform_1, window_bounds = array<i64: 1, 8, 32>}, {transform_indices = @transform_2, window_bounds = array<i64: 1, 8, 8>}, {transform_indices = @transform_3, window_bounds = array<i64: 1, 8, 1>}, {transform_indices = @transform_4, window_bounds = array<i64: 1, 8, 32>}]} {
    %c0_i32 = arith.constant 0 : i32
    %0 = arith.cmpi eq, %arg2, %c0_i32 : i32
    %1 = arith.extui %0 : i1 to i32
    %c0_i32_0 = arith.constant 0 : i32
    %2 = arith.cmpi ne, %1, %c0_i32_0 : i32
    scf.if %2 {
      %cst_29 = arith.constant 0xFF800000 : f32
      %42 = vector.broadcast %cst_29 : f32 to vector<8x1xf32>
      %c0_30 = arith.constant 0 : index
      %c0_31 = arith.constant 0 : index
      %43 = vector.load %arg8[%c0_30, %c0_31] : memref<8x1xf32, #tpu.memory_space<vmem>>, vector<8x1xf32>
      tpu.vector_store %arg8[%c0_30, %c0_31], %42 {strides = array<i32>} : memref<8x1xf32, #tpu.memory_space<vmem>>, vector<8x1xf32>,
      %cst_32 = arith.constant 0.000000e+00 : f32
      %44 = vector.broadcast %cst_32 : f32 to vector<8x1xf32>
      %c0_33 = arith.constant 0 : index
      %c0_34 = arith.constant 0 : index
      %45 = vector.load %arg9[%c0_33, %c0_34] : memref<8x1xf32, #tpu.memory_space<vmem>>, vector<8x1xf32>
      tpu.vector_store %arg9[%c0_33, %c0_34], %44 {strides = array<i32>} : memref<8x1xf32, #tpu.memory_space<vmem>>, vector<8x1xf32>,
      %cst_35 = arith.constant 0.000000e+00 : f32
      %46 = vector.broadcast %cst_35 : f32 to vector<8x32xf32>
      %c0_36 = arith.constant 0 : index
      %c0_37 = arith.constant 0 : index
      %47 = vector.load %arg10[%c0_36, %c0_37] : memref<8x32xf32, #tpu.memory_space<vmem>>, vector<8x32xf32>
      tpu.vector_store %arg10[%c0_36, %c0_37], %46 {strides = array<i32>} : memref<8x32xf32, #tpu.memory_space<vmem>>, vector<8x32xf32>,
    } else {
    }
    %c0 = arith.constant 0 : index
    %c0_1 = arith.constant 0 : index
    %c0_2 = arith.constant 0 : index
    %3 = vector.load %arg3[%c0, %c0_1, %c0_2] : memref<1x8x32xf32, #tpu.memory_space<vmem>>, vector<1x8x32xf32>
    %4 = vector.shape_cast %3 : vector<1x8x32xf32> to vector<8x32xf32>
    %cst = arith.constant 0.353553385 : f32
    %5 = vector.broadcast %cst : f32 to vector<8x32xf32>
    %6 = arith.mulf %4, %5 : vector<8x32xf32>
    %c0_3 = arith.constant 0 : index
    %c0_4 = arith.constant 0 : index
    %c0_5 = arith.constant 0 : index
    %7 = vector.load %arg4[%c0_3, %c0_4, %c0_5] : memref<1x8x32xf32, #tpu.memory_space<vmem>>, vector<1x8x32xf32>
    %8 = vector.shape_cast %7 : vector<1x8x32xf32> to vector<8x32xf32>
    %cst_6 = arith.constant dense<0.000000e+00> : vector<8x8xf32>
    %9 = tpu.matmul %6, %8, %cst_6 {dimension_numbers = #tpu.dot_dimension_numbers<[1], [1], [0], [0], [0, 0, 1, 0], [], []>} : vector<8x32xf32>, vector<8x32xf32>, vector<8x8xf32> -> vector<8x8xf32>
    %c0_7 = arith.constant 0 : index
    %c0_8 = arith.constant 0 : index
    %c0_9 = arith.constant 0 : index
    %10 = vector.load %arg5[%c0_7, %c0_8, %c0_9] : memref<1x8x8xf32, #tpu.memory_space<vmem>>, vector<1x8x8xf32>
    %11 = vector.shape_cast %10 : vector<1x8x8xf32> to vector<8x8xf32>
    %cst_10 = arith.constant 1.000000e+00 : f32
    %12 = vector.broadcast %cst_10 : f32 to vector<8x8xf32>
    %13 = arith.subf %12, %11 : vector<8x8xf32>
    %cst_11 = arith.constant -1.000000e+30 : f32
    %14 = vector.broadcast %cst_11 : f32 to vector<8x8xf32>
    %15 = arith.mulf %13, %14 : vector<8x8xf32>
    %16 = arith.addf %9, %15 : vector<8x8xf32>
    %c0_12 = arith.constant 0 : index
    %c0_13 = arith.constant 0 : index
    %17 = vector.load %arg8[%c0_12, %c0_13] : memref<8x1xf32, #tpu.memory_space<vmem>>, vector<8x1xf32>
    %cst_14 = arith.constant dense<0xFF800000> : vector<8xf32>
    %18 = vector.multi_reduction <maximumf>, %16, %cst_14 [1] : vector<8x8xf32> to vector<8xf32>
    %19 = vector.shape_cast %18 : vector<8xf32> to vector<8x1xf32>
    %20 = arith.maximumf %17, %19 : vector<8x1xf32>
    %21 = arith.subf %17, %20 : vector<8x1xf32>
    %22 = math.exp %21 : vector<8x1xf32>
    %23 = vector.broadcast %20 : vector<8x1xf32> to vector<8x8xf32>
    %24 = arith.subf %16, %23 : vector<8x8xf32>
    %25 = math.exp %24 : vector<8x8xf32>
    %c0_15 = arith.constant 0 : index
    %c0_16 = arith.constant 0 : index
    %26 = vector.load %arg9[%c0_15, %c0_16] : memref<8x1xf32, #tpu.memory_space<vmem>>, vector<8x1xf32>
    %27 = arith.mulf %22, %26 : vector<8x1xf32>
    %cst_17 = arith.constant dense<0.000000e+00> : vector<8xf32>
    %28 = vector.multi_reduction <add>, %25, %cst_17 [1] : vector<8x8xf32> to vector<8xf32>
    %29 = vector.shape_cast %28 : vector<8xf32> to vector<8x1xf32>
    %30 = arith.addf %27, %29 : vector<8x1xf32>
    %c0_18 = arith.constant 0 : index
    %c0_19 = arith.constant 0 : index
    %31 = vector.load %arg9[%c0_18, %c0_19] : memref<8x1xf32, #tpu.memory_space<vmem>>, vector<8x1xf32>
    tpu.vector_store %arg9[%c0_18, %c0_19], %30 {strides = array<i32>} : memref<8x1xf32, #tpu.memory_space<vmem>>, vector<8x1xf32>,
    %c0_20 = arith.constant 0 : index
    %c0_21 = arith.constant 0 : index
    %32 = vector.load %arg10[%c0_20, %c0_21] : memref<8x32xf32, #tpu.memory_space<vmem>>, vector<8x32xf32>
    %33 = vector.broadcast %22 : vector<8x1xf32> to vector<8x32xf32>
    %34 = arith.mulf %33, %32 : vector<8x32xf32>
    %cst_22 = arith.constant dense<0.000000e+00> : vector<8x32xf32>
    %35 = tpu.matmul %25, %8, %cst_22 {dimension_numbers = #tpu.dot_dimension_numbers<[1], [0], [0], [1], [0, 0, 1, 1], [], []>} : vector<8x8xf32>, vector<8x32xf32>, vector<8x32xf32> -> vector<8x32xf32>
    %36 = arith.addf %34, %35 : vector<8x32xf32>
    %c0_23 = arith.constant 0 : index
    %c0_24 = arith.constant 0 : index
    %37 = vector.load %arg10[%c0_23, %c0_24] : memref<8x32xf32, #tpu.memory_space<vmem>>, vector<8x32xf32>
    tpu.vector_store %arg10[%c0_23, %c0_24], %36 {strides = array<i32>} : memref<8x32xf32, #tpu.memory_space<vmem>>, vector<8x32xf32>,
    %c0_25 = arith.constant 0 : index
    %c0_26 = arith.constant 0 : index
    %38 = vector.load %arg8[%c0_25, %c0_26] : memref<8x1xf32, #tpu.memory_space<vmem>>, vector<8x1xf32>
    tpu.vector_store %arg8[%c0_25, %c0_26], %20 {strides = array<i32>} : memref<8x1xf32, #tpu.memory_space<vmem>>, vector<8x1xf32>,
    %c0_i32_27 = arith.constant 0 : i32
    %39 = arith.cmpi eq, %arg2, %c0_i32_27 : i32
    %40 = arith.extui %39 : i1 to i32
    %c0_i32_28 = arith.constant 0 : i32
    %41 = arith.cmpi ne, %40, %c0_i32_28 : i32
    scf.if %41 {
      %c0_29 = arith.constant 0 : index
      %c0_30 = arith.constant 0 : index
      %42 = vector.load %arg9[%c0_29, %c0_30] : memref<8x1xf32, #tpu.memory_space<vmem>>, vector<8x1xf32>
      %43 = tpu.reciprocal %42 {approx = true} : vector<8x1xf32> -> vector<8x1xf32>
      %44 = arith.mulf %42, %43 : vector<8x1xf32>
      %cst_31 = arith.constant 2.000000e+00 : f32
      %45 = vector.broadcast %cst_31 : f32 to vector<8x1xf32>
      %46 = arith.subf %45, %44 : vector<8x1xf32>
      %47 = arith.mulf %43, %46 : vector<8x1xf32>
      %c0_32 = arith.constant 0 : index
      %c0_33 = arith.constant 0 : index
      %c0_34 = arith.constant 0 : index
      %48 = vector.load %arg6[%c0_32, %c0_33, %c0_34] : memref<1x8x1xf32, #tpu.memory_space<vmem>>, vector<1x8x1xf32>
      %49 = vector.shape_cast %48 : vector<1x8x1xf32> to vector<8x1xf32>
      %c0_35 = arith.constant 0 : index
      %c0_36 = arith.constant 0 : index
      %50 = vector.load %arg10[%c0_35, %c0_36] : memref<8x32xf32, #tpu.memory_space<vmem>>, vector<8x32xf32>
      %51 = vector.broadcast %47 : vector<8x1xf32> to vector<8x32xf32>
      %52 = arith.mulf %50, %51 : vector<8x32xf32>
      %53 = vector.broadcast %49 : vector<8x1xf32> to vector<8x32xf32>
      %54 = arith.mulf %52, %53 : vector<8x32xf32>
      %c0_37 = arith.constant 0 : index
      %c0_38 = arith.constant 0 : index
      %c0_39 = arith.constant 0 : index
      %55 = vector.load %arg7[%c0_37, %c0_38, %c0_39] : memref<1x8x32xf32, #tpu.memory_space<vmem>>, vector<1x8x32xf32>
      %56 = vector.shape_cast %55 : vector<1x8x32xf32> to vector<8x32xf32>
      %57 = vector.shape_cast %54 : vector<8x32xf32> to vector<1x8x32xf32>
      tpu.vector_store %arg7[%c0_37, %c0_38, %c0_39], %57 {strides = array<i32>} : memref<1x8x32xf32, #tpu.memory_space<vmem>>, vector<1x8x32xf32>,
    } else {
    }
    return
  }
  func.func @transform_0(%arg0: i32, %arg1: i32, %arg2: i32) -> (i32, i32, i32) {
    %c0_i32 = arith.constant 0 : i32
    %c0_i32_0 = arith.constant 0 : i32
    return %arg0, %arg1, %c0_i32 : i32, i32, i32
  }
  func.func @transform_1(%arg0: i32, %arg1: i32, %arg2: i32) -> (i32, i32, i32) {
    %c0_i32 = arith.constant 0 : i32
    %c0_i32_0 = arith.constant 0 : i32
    return %arg0, %arg2, %c0_i32 : i32, i32, i32
  }
  func.func @transform_2(%arg0: i32, %arg1: i32, %arg2: i32) -> (i32, i32, i32) {
    %c0_i32 = arith.constant 0 : i32
    return %arg0, %arg1, %arg2 : i32, i32, i32
  }
  func.func @transform_3(%arg0: i32, %arg1: i32, %arg2: i32) -> (i32, i32, i32) {
    %c0_i32 = arith.constant 0 : i32
    %c0_i32_0 = arith.constant 0 : i32
    return %arg0, %arg1, %c0_i32 : i32, i32, i32
  }
  func.func @transform_4(%arg0: i32, %arg1: i32, %arg2: i32) -> (i32, i32, i32) {
    %c0_i32 = arith.constant 0 : i32
    %c0_i32_0 = arith.constant 0 : i32
    return %arg0, %arg1, %c0_i32 : i32, i32, i32
  }
}

</mosaic_0001>

<bundles_post_ra>
// kernel: tpu_custom_call.1
= control target key start
LH: loop header
LB: loop body
LE: loop exit
PB: predicated region body
PF: predicated region fallthrough
CT: control target
= control target key end

     0   :  { %9 = vsyncpa [#allocation6], 0  ;;  %s1258_s0 = inlined_call_operand.vmem [shape: f32[2,8,32], index: 0, kind: input, shape index: {}]   ;;  %s1259_s1 = inlined_call_operand.hbm [shape: f32[2,8,32], index: 1, kind: input, shape index: {}]   ;;  %s1260_s2 = inlined_call_operand.hbm [shape: f32[2,8,8], index: 2, kind: input, shape index: {}]   ;;  %s1261_s3 = inlined_call_operand.vmem [shape: f32[2,8,1], index: 3, kind: input, shape index: {}]   ;;  %s1262_s4 = inlined_call_operand.hbm [shape: f32[2,8,32], index: 4, kind: output, shape index: {}]  }
   0x1   :  { %11 = vsyncpa [#allocation6 + $0x1], 0 }
   0x2   :  { %12 = vsyncpa [#allocation9], 0 }
   0x3   :  { %14 = vsyncpa [#allocation9 + $0x1], 0 }
   0x4   :  { %15 = vsyncpa [#allocation7], 0 }
   0x5   :  { %17 = vsyncpa [#allocation7 + $0x1], 0  ;;  %s1006_s15 = smov 0   ;;  %s1008_s16 = smov 0  }
   0x6   :  { %s1010_s17 = smov 0   ;;  %s1012_s18 = smov 0  }
   0x7   :  { %s1014_s19 = smov 0   ;;  %s1016_s20 = smov 0  }
   0x8 LB: > { %s712_s21 = sadd.s32 4294967295, %s972_s20   ;;  %s713_s22 = sadd.s32 4294967294, %s972_s20   ;;  %s972_s20 = sphi %s1016_s20, %s23_s20   ;;  %s968_s19 = sphi %s1014_s19, %s1282_s19   ;;  %s964_s18 = sphi %s1012_s18, %s1281_s18   ;;  %s960_s17 = sphi %s1010_s17, %s1280_s17   ;;  %s956_s16 = sphi %s1008_s16, %s1279_s16   ;;  %s952_s15 = sphi %s1006_s15, %s1278_s15  }
   0x9   : > { %s42_s23 = sadd.s32 1, %s968_s19  ;;  %s79_s24 = sadd.s32 1, %s960_s17 }
   0xa   : > { %p44_p0 = scmp.ge.s32.totalorder %s42_s23, 2  ;;  %p86_p1 = scmp.ne.s32.totalorder %s960_s17, %s956_s16 }
   0xb   : > { %p87_p2 = scmp.eq.s32.totalorder %s972_s20, 0  ;;  %p92_p3 = scmp.ne.s32.totalorder %s956_s16, %s952_s15 }
   0xc   : > { %s1284_s23 = smov (%p44_p0, %s42_s23), 0  ;;  %p93_p5 = scmp.eq.s32.totalorder %s712_s21, 0 }
   0xd   : > { %p1047_p4 = por %p87_p2, %p86_p1  ;;  %s74_s26 = ssub.s32 %s968_s19, %s1284_s23 }
   0xe   : > { %p176_p6 = scmp.eq.s32.totalorder %s712_s21, 1  ;;  %p77_p7 = scmp.eq.s32.totalorder %s74_s26, 0 }
   0xf   : > { %p1053_p8 = por %p93_p5, %p92_p3  ;;  %p182_p10 = scmp.eq.s32.totalorder %s713_s22, 1 }
  0x10   : > { %p1057_p9 = por %p176_p6, %p86_p1  ;;  %p764_p13 = scmp.lt.s32.totalorder %s972_s20, 2 }
  0x11   : > { %s1266_s27 = scalar_select %p1053_p8, 1, 0 }
  0x12   : > { %s1267_s28 = scalar_select %p1057_p9, 1, 0 }
  0x13   : > { %s1062_s29 = scalar_select %p77_p7, %s960_s17, %s79_s24  }
  0x14   : > { %p1064_p11 = por %p182_p10, %p92_p3  ;;  %s1071_s5 = sand.u32 1, %s960_s17  }
  0x15   : > { %s716_s6 = sshll.u32 %s1071_s5, 3  ;;  %s717_s7 = sshll.u32 %s968_s19, 7 }
  0x16   : > { %s1268_s30 = scalar_select %p1064_p11, 1, 0 }
  0x17   : > { %s1080_s10 = scalar_lea.hbm %s1259_s1, %s717_s7  ;;  %s216_s11 = scalar_lea.vmem [#allocation5], %s716_s6 }
  0x18   : > { %s224_s12 = sshll.u32 %s216_s11, 4  ;;  %p1088_p0 = pnand %p764_p13, %p1047_p4  ;;  %s1084_s12 = int_to_ptr.vmem [resolvable:$true] %s224_s12 }
  0x19   : > { %s213_s14 = scalar_lea.sflag [#allocation6], %s1071_s5  ;;  %s826_s21 = scalar_lea.hbm %s1080_s10, 128 }
  0x1a   : > { %p827_p3 = scmp.ne.s32.totalorder %s1080_s10, %s826_s21  ;;  %p828_p5 = pneg %p1088_p0 }
  0x1b   : > { %s831_s25 = scalar_lea.hbm %s1259_s1, 256  ;;  %p832_p4 = scmp.lt.u32.totalorder %s1080_s10, %s1259_s1 }
  0x1c   : > { %p829_p6 = pnand %p828_p5, %p827_p3  ;;  %p833_p10 = scmp.lt.u32.totalorder %s831_s25, %s826_s21 }
  0x1d   : > { %p835_p12 = scmp.lt.u32.totalorder %s826_s21, %s1080_s10 }
  0x1e   : > { %p830_p7 = pneg %p829_p6  ;;  %p834_p13 = por %p833_p10, %p832_p4 }
  0x20   : > { %p836_p1 = por %p835_p12, %p834_p13 }
  0x22   : > { %p837_p2 = pnand %p836_p1, %p830_p7 }
  0x24   : > { %840 = shalt.err (!%p837_p2)
}
  0x25   : > { %s841_s9 = scalar_lea.vmem %s1084_s12, 128  ;;  %s974_s11 = smov [#allocation5]  }
  0x26   : > { %p842_p3 = scmp.ne.s32.totalorder %s1084_s12, %s841_s9  ;;  %s846_s22 = sshll.u32 %s974_s11, 4  ;;  %s847_s22 = int_to_ptr.vmem [resolvable:$false] %s846_s22 }
  0x27   : > { %s848_s24 = scalar_lea.vmem %s847_s22, 256  ;;  %p849_p9 = scmp.lt.s32.totalorder %s1084_s12, %s847_s22 }
  0x28   : > { %p844_p6 = pnand %p842_p3, %p828_p5  ;;  %p850_p4 = scmp.lt.s32.totalorder %s848_s24, %s841_s9 }
  0x2a   : > { %p845_p11 = pneg %p844_p6  ;;  %p851_p10 = por %p850_p4, %p849_p9 }
  0x2c   : > { %p852_p12 = pnand %p851_p10, %p845_p11 }
  0x2e   : > { %855 = shalt.err (!%p852_p12)
}
  0x2f   : > { %756 = dma.hbm_to_vmem [thread:$0]  (!%p1088_p0), %s1080_s10, 128, %s1084_s12, %s213_s14  }
  0x30   : > { %p1270_p1 = scmp.lt.s32.totalorder %s972_s20, 3  ;;  %p1271_p2 = scmp.ge.s32.totalorder %s972_s20, 1 }
  0x31   : > { %s1133_s8 = scalar_lea.hbm %s1260_s2, %s717_s7  ;;  %s235_s9 = scalar_lea.vmem [#allocation8], %s716_s6 }
  0x32   : > { %p1124_p7 = pnand %p1271_p2, %p1270_p1  ;;  %s244_s11 = sshll.u32 %s235_s9, 4  ;;  %s245_s11 = int_to_ptr.vmem [resolvable:$true] %s244_s11 }
  0x33   : > { %s232_s10 = scalar_lea.sflag [#allocation9], %s1071_s5  ;;  %s856_s12 = scalar_lea.hbm %s1133_s8, 128 }
  0x34   : > { %s1272_s21 = scalar_select %p1124_p7, 1, 0 }
  0x35   : > { %p857_p9 = scmp.ne.s32.totalorder %s1133_s8, %s856_s12  ;;  %s861_s7 = scalar_lea.hbm %s1260_s2, 256 }
  0x36   : > { %p862_p3 = scmp.lt.u32.totalorder %s1133_s8, %s1260_s2  ;;  %p863_p6 = scmp.lt.u32.totalorder %s861_s7, %s856_s12 }
  0x37   : > { %p859_p11 = pnand %p857_p9, %p828_p5  ;;  %p865_p10 = scmp.lt.u32.totalorder %s856_s12, %s1133_s8 }
  0x38   : > { %p864_p4 = por %p863_p6, %p862_p3 }
  0x39   : > { %p860_p13 = pneg %p859_p11 }
  0x3a   : > { %p866_p12 = por %p865_p10, %p864_p4 }
  0x3c   : > { %p867_p1 = pnand %p866_p12, %p860_p13 }
  0x3e   : > { %870 = shalt.err (!%p867_p1)
}
  0x3f   : > { %s871_s5 = scalar_lea.vmem %s245_s11, 128  ;;  %s975_s6 = smov [#allocation8]  }
  0x40   : > { %p872_p2 = scmp.ne.s32.totalorder %s245_s11, %s871_s5  ;;  %s876_s26 = sshll.u32 %s975_s6, 4  ;;  %s877_s26 = int_to_ptr.vmem [resolvable:$false] %s876_s26 }
  0x41   : > { %s878_s9 = scalar_lea.vmem %s877_s26, 256  ;;  %p879_p8 = scmp.lt.s32.totalorder %s245_s11, %s877_s26 }
  0x42   : > { %p874_p9 = pnand %p872_p2, %p828_p5  ;;  %p880_p7 = scmp.lt.s32.totalorder %s878_s9, %s871_s5 }
  0x44   : > { %p875_p11 = pneg %p874_p9  ;;  %p881_p3 = por %p880_p7, %p879_p8 }
  0x46   : > { %p882_p6 = pnand %p881_p3, %p875_p11 }
  0x48   : > { %885 = shalt.err (!%p882_p6)
}
  0x49   : > { %759 = dma.hbm_to_vmem [thread:$0]  (!%p1088_p0), %s1133_s8, 128, %s245_s11, %s232_s10  }
  0x4a   : > { %p1273_p13 = scmp.ne.s32.totalorder %s1272_s21, 0 }
  0x4b   : > { %s1160_s12 = sand.u32 (!%p1273_p13), 1, %s956_s16   ;;  %p1274_p8 = scmp.ne.s32.totalorder (!%p1273_p13), %s1266_s27, 0 }
  0x4c   : > { %263 = sbr.rel (%p1273_p13) target bundleno = 915 (0x393), region = 36  ;;  %s1163_s14 = sshll.u32 (!%p1273_p13), %s1160_s12, 3 }
  0x4d   : > { %s266_s22 = scalar_lea.sflag (!%p1273_p13), [#allocation6], %s1160_s12  ;;  %s269_s7 = scalar_lea.vmem (!%p1273_p13), [#allocation5], %s1163_s14 }
  0x53   : > { %939 = dma.done.wait (%p1274_p8), %s266_s22, 128  }
  0x54   : > { %941 = vsyncadd (%p1274_p8), %s266_s22, 4294967168  ;;  %s275_s13 = scalar_lea.sflag [#allocation9], %s1160_s12  ;;  %s278_s21 = scalar_lea.vmem [#allocation8], %s1163_s14 }
  0x55   : > { %943 = dma.done.wait (%p1274_p8), %s275_s13, 128  }
  0x56   : > { %945 = vsyncadd (%p1274_p8), %s275_s13, 4294967168  ;;  %vm343_vm0 = vcmask 261120   ;;  %p322_p0 = scmp.lt.s32.totalorder %s964_s18, 1  ;;  %v976_v0 = vmov 0.0   ;;  %vm977_vm1 = vmmov 0   ;;  %v347_v1 = vld [vmem:[%s269_s7] sm:$0xff] }
  0x57   : > { %737 = vmatprep.subr.mxu0 %v976_v0  ;;  %344 = vst.msk [vmem:[#allocation4] sm:$0xff] %vm343_vm0, %v976_v0  ;;  %739 = vmatprep.mubr.msk.f32.mxu0 %vm977_vm1, %v976_v0  ;;  %vm340_vm2 = vcmask 7168   ;;  %v978_v4 = vmov -inf   ;;  %v348_v5 = vld [vmem:[%s278_s21] sm:$0xff]  ;;  %vm429_vm3 = vcmask 64512   ;;  %v979_v12 = vmov 0  }
  0x58   : > { %s1180_s8 = scalar_select %p322_p0, %s964_s18, 1  ;;  %742 = vmatprep.subr.mxu1 %v976_v0  ;;  %744 = vmatprep.mubr.msk.f32.mxu1 %vm977_vm1, %v976_v0  ;;  %341 = vst.msk [vmem:[#allocation2] sm:$0xff] %vm340_vm2, %v978_v4  ;;  %342 = vst.msk [vmem:[#allocation3] sm:$0xff] %vm340_vm2, %v976_v0  ;;  %v349_v6 = vsub.f32 1.0, %v348_v5 }
  0x59   : > { %738 = vmatpush3.xpose.msk.msra.mxu0 %vm343_vm0, %v347_v1  ;;  %743 = vmatpush3.msra.mxu1 %v347_v1  ;;  %s730_s26 = sshll.u32 %s964_s18, 7  ;;  %s321_s9 = scalar_lea.vmem [#allocation10], %s1163_s14 }
  0x5a   : > { %s724_s11 = sshll.u32 %s1180_s8, 3  ;;  %v350_v7 = vmul.f32 -1e+30, %v349_v6  ;;  %818 = vset.pattern.permute.xlu0 %v979_v12  ;;  %819 = vset.pattern.permute.xlu1 %v979_v12  ;;  %s574_s22 = sshll.u32 %s321_s9, 4  ;;  %s1210_s22 = int_to_ptr.vmem [resolvable:$true] %s574_s22 }
  0x5b   : > { %s328_s24 = scalar_lea.vmem %s1258_s0, %s724_s11  ;;  %s335_s6 = scalar_lea.vmem %s1261_s3, %s724_s11 }
  0x5c   : > { %v345_v2 = vld [vmem:[%s328_s24] sm:$0xff]  ;;  %s1208_s21 = scalar_lea.hbm %s1262_s4, %s730_s26  ;;  %s560_s8 = scalar_lea.sflag [#allocation7], %s1160_s12 }
  0x5d   : > { %v346_v3 = vmul.f32 0.35355338, %v345_v2  ;;  %v544_v33 = vld [vmem:[%s335_s6] sm:$0xff]  ;;  %s886_s11 = scalar_lea.vmem %s1210_s22, 128  ;;  %p1275_p7 = scmp.ne.s32.totalorder %s1267_s28, 0 }
  0x5e   : > { %v453_v34 = vld [vmem:[#allocation4] sm:$0xff]  ;;  %p887_p5 = scmp.ne.s32.totalorder %s1210_s22, %s886_s11  ;;  %s980_s18 = smov [#allocation10]  }
  0x5f   : > { %740 = vmatmul.mubr.msk.f32.vlgmr.msra.gmra.mrb[0].mxu0 %vm343_vm0, %v346_v3  ;;  %v428_v13 = vld [vmem:[#allocation2] sm:$0xff]  ;;  %v445_v24 = vld [vmem:[#allocation3] sm:$0xff]  ;;  %s890_s14 = sshll.u32 %s980_s18, 4  ;;  %s891_s14 = int_to_ptr.vmem [resolvable:$false] %s890_s14 }
  0x60   : > { %p888_p4 = pnand %p887_p5, %p1275_p7  ;;  %s892_s27 = scalar_lea.vmem %s891_s14, 256 }
  0x61   : > { %p893_p12 = scmp.lt.s32.totalorder %s1210_s22, %s891_s14  ;;  %p894_p1 = scmp.lt.s32.totalorder %s892_s27, %s886_s11 }
  0x62   : > { %p889_p10 = pneg %p888_p4 }
  0x63   : > { %p895_p2 = por %p894_p1, %p893_p12 }
  0x65   : > { %p896_p9 = pnand %p895_p2, %p889_p10 }
 0x132   : > { %v424_v8 = vpop.f32.mrb[0].mxu0 }
 0x133   : > { %v425_v9 = vadd.f32 %v424_v8, %v350_v7  ;;  %v741_v10 = vpop.f32.mrb[1].mxu0 }
 0x135   : > { %v430_v11 = vsel %vm429_vm3, %v425_v9, -inf }
 0x136   : > { %431 = vmax.xlane.f32.xlu0 %v430_v11 }
 0x1c3   : > { %v432_v14 = vpop.xlane.xlu0 %431 }
 0x1c4   : > { %v433_v15 = vmax.f32 %v428_v13, %v432_v14 }
 0x1c6   : > { %v434_v16 = vsub.f32 %v428_v13, %v433_v15  ;;  %535 = vst.msk [vmem:[#allocation2] sm:$0xff] %vm340_vm2, %v433_v15  ;;  %439 = vperm.xlu0 %818, %v433_v15  }
 0x1c8   : > { %v435_v22 = vmul.f32 1.442695, %v434_v16 }
 0x245   : > { %v440_v17 = vpop.permute.xlu0 %439 }
 0x246   : > { %v442_v18 = vsub.f32 %v425_v9, %v440_v17 }
 0x248   : > { %v443_v19 = vmul.f32 1.442695, %v442_v18 }
 0x24a   : > { %820 = vpow2.f32 %v443_v19 }
 0x24b   : > { %822 = vpow2.f32 %v435_v22 }
 0x254   : > { %v821_v20 = vpop.eup %820 }
 0x255   : > { %745 = vmatmul.mubr.msk.f32.vlgmr.msra.gmra.mrb[0].mxu1 %vm429_vm3, %v821_v20  ;;  %v447_v21 = vsel %vm429_vm3, %v821_v20, 0.0  ;;  %v823_v23 = vpop.eup %822 }
 0x256   : > { %448 = vadd.xlane.f32.xlu1 %v447_v21  ;;  %v446_v25 = vmul.f32 %v823_v23, %v445_v24 }
 0x267   : > { %456 = vperm.xlu1 %819, %v823_v23  }
 0x2e3   : > { %v449_v26 = vpop.xlane.xlu1 %448 }
 0x2e4   : > { %v450_v27 = vadd.f32 %v449_v26, %v446_v25 }
 0x2e6   : > { %452 = vst.msk [vmem:[#allocation3] sm:$0xff] %vm340_vm2, %v450_v27 }
 0x2e7   : > { %v457_v35 = vpop.permute.xlu1 %456 }
 0x2e8   : > { %v459_v36 = vmul.f32 %v457_v35, %v453_v34 }
 0x2ed   : > { %v539_v28 = vld [vmem:[#allocation3] sm:$0xff] }
 0x2ee   : > { %824 = vrcp.f32 %v539_v28 }
 0x2f8   : > { %v825_v29 = vpop.eup %824 }
 0x2f9   : > { %v541_v30 = vmul.f32 %v825_v29, %v539_v28 }
 0x2fb   : > { %v542_v31 = vsub.f32 2.0, %v541_v30 }
 0x2fd   : > { %v543_v32 = vmul.f32 %v825_v29, %v542_v31 }
 0x2ff   : > { %548 = vperm.xlu1 %819, %v543_v32  }
 0x303   : > { %554 = vperm.xlu1 %819, %v544_v33  }
 0x328   : > { %v529_v37 = vpop.f32.mrb[0].mxu1 }
 0x329   : > { %v533_v38 = vadd.f32 %v529_v37, %v459_v36  ;;  %v746_v39 = vpop.f32.mrb[1].mxu1 }
 0x32b   : > { %534 = vst.msk [vmem:[#allocation4] sm:$0xff] %vm343_vm0, %v533_v38 }
 0x332   : > { %v545_v41 = vld [vmem:[#allocation4] sm:$0xff] }
 0x37e   : > { %v549_v40 = vpop.permute.xlu1 %548 }
 0x37f   : > { %v551_v42 = vmul.f32 %v549_v40, %v545_v41 }
 0x382   : > { %v555_v43 = vpop.permute.xlu1 %554 }
 0x383   : > { %v557_v44 = vmul.f32 %v555_v43, %v551_v42 }
 0x385   : > { %558 = vst.msk [vmem:[%s321_s9] sm:$0xff] %vm343_vm0, %v557_v44 }
 0x386   : > { %899 = shalt.err (!%p896_p9)
}
 0x387   : > { %s900_s12 = scalar_lea.hbm %s1208_s21, 128  ;;  %s904_s25 = scalar_lea.hbm %s1262_s4, 256 }
 0x388   : > { %p901_p11 = scmp.ne.s32.totalorder %s1208_s21, %s900_s12  ;;  %p905_p13 = scmp.lt.u32.totalorder %s1208_s21, %s1262_s4 }
 0x389   : > { %p906_p8 = scmp.lt.u32.totalorder %s904_s25, %s900_s12  ;;  %p908_p5 = scmp.lt.u32.totalorder %s900_s12, %s1208_s21 }
 0x38a   : > { %p902_p3 = pnand %p901_p11, %p1275_p7 }
 0x38b   : > { %p907_p0 = por %p906_p8, %p905_p13 }
 0x38c   : > { %p903_p6 = pneg %p902_p3 }
 0x38d   : > { %p909_p4 = por %p908_p5, %p907_p0 }
 0x38f   : > { %p910_p10 = pnand %p909_p4, %p903_p6 }
 0x391   : > { %913 = shalt.err (!%p910_p10)
}
 0x392   : > { %751 = dma.vmem_to_hbm [thread:$0]  (%p1275_p7), %s1210_s22, 128, %s1208_s21, %s560_s8  }
 0x393 PF: > { %s586_s26 = sand.u32 1, %s952_s15   ;;  %p1276_p12 = scmp.ne.s32.totalorder %s1268_s30, 0 }
 0x394   : > { %p1277_p1 = scmp.ge.s32.totalorder %s972_s20, 2  ;;  %s587_s9 = scalar_lea.sflag [#allocation7], %s586_s26 }
 0x396   : > { %p761_p2 = pnand %p1277_p1, %p1276_p12 }
 0x398   : > { %947 = dma.done.wait (!%p761_p2), %s587_s9, 128  }
 0x399   : > { %949 = vsyncadd (!%p761_p2), %s587_s9, 4294967168  ;;  %s23_s20 = sadd.s32 1, %s972_s20   ;;  %s1278_s15 = smov %s956_s16 }
 0x39a   : > { %p20_p9 = scmp.ge.s32.totalorder %s23_s20, 4   ;;  %s1279_s16 = smov %s960_s17 }
 0x39b   : > { %s1280_s17 = smov %s1062_s29  ;;  %s1281_s18 = smov %s968_s19 }
 0x39c   : > { %s1282_s19 = smov %s1284_s23  ;;  %22 = sbr.rel (!%p20_p9) target bundleno = 8 (0x8), region = 108 }
 0x3a3   :  { %592 = vsyncpa [#allocation6], 1 }
 0x3a4   :  { %594 = vsyncpa [#allocation6 + $0x1], 1 }
 0x3a5   :  { %595 = vsyncpa [#allocation9], 1 }
 0x3a6   :  { %597 = vsyncpa [#allocation9 + $0x1], 1 }
 0x3a7   :  { %598 = vsyncpa [#allocation7], 1 }
 0x3a8   :  { %600 = vsyncpa [#allocation7 + $0x1], 1 }

</bundles_post_ra>
